<compile_context>
chip_gen: v6e
topology: v6e:2x2x1
jax: 0.10.0
libtpu: 0.0.40
codegen_flags: <defaults>
</compile_context>

<pallas_src>
import functools
import math

import jax
import jax.numpy as jnp
from jax.experimental import pallas as pl
from jax.experimental.pallas import tpu as pltpu

_VMEM_LIMIT = 48 * 1024 * 1024   # explicit scoped-VMEM budget (headroom < 64 MiB)
_LN_EPS = 1e-5


# ---------------------------------------------------------------------------
# Kernels
# ---------------------------------------------------------------------------

def _linear_kernel(x_ref, w_ref, b_ref, o_ref):
    """o = x @ W + b over a row tile. bf16 operands, f32 accumulation."""
    x = x_ref[...].astype(w_ref.dtype)
    acc = jnp.dot(x, w_ref[...], preferred_element_type=jnp.float32)
    o_ref[...] = (acc + b_ref[...]).astype(o_ref.dtype)


def _mha_core_kernel(q_ref, k_ref, v_ref, y_ref, attn_ref, *, scale):
    """One batch element; heads handled by batched einsums (no head loop)."""
    q = q_ref[0]                                     # (H, T, D) bf16
    k = k_ref[0]                                     # (H, S, D) bf16
    v = v_ref[0]                                     # (H, S, D) bf16

    s = jnp.einsum("htd,hsd->hts", q, k,
                   preferred_element_type=jnp.float32) * scale      # (H, T, S)
    s = s - jnp.max(s, axis=-1, keepdims=True)
    p = jnp.exp(s)
    inv_l = pl.reciprocal(jnp.sum(p, axis=-1, keepdims=True), approx=True)
    p = p * inv_l                                                    # softmax, f32
    # attn_drop: identity in eval mode

    y = jnp.einsum("hts,hsd->htd", p.astype(v.dtype), v,
                   preferred_element_type=jnp.float32)               # (H, T, D)

    y_ref[0] = y.astype(y_ref.dtype)
    attn_ref[0] = jnp.mean(p, axis=0).astype(attn_ref.dtype)         # (T, S)


def _proj_add_ln_kernel(y_ref, r_ref, w_ref, b_ref, g_ref, beta_ref, o_ref, *, eps):
    """o = LayerNorm(residual + y @ Wp + bp)."""
    y = y_ref[...].astype(w_ref.dtype)
    h = jnp.dot(y, w_ref[...], preferred_element_type=jnp.float32) + b_ref[...]
    h = h + r_ref[...].astype(jnp.float32)
    mu = jnp.mean(h, axis=-1, keepdims=True)
    c = h - mu
    var = jnp.mean(c * c, axis=-1, keepdims=True)
    o = c * jax.lax.rsqrt(var + eps) * g_ref[...] + beta_ref[...]
    o_ref[...] = o.astype(o_ref.dtype)


def _ffn_add_ln_kernel(x_ref, w1_ref, b1_ref, w2_ref, b2_ref, g_ref, beta_ref,
                       o_ref, *, eps):
    """o = LayerNorm(x + ReLU(x @ W1 + b1) @ W2 + b2)."""
    x = x_ref[...].astype(jnp.float32)
    h1 = jnp.dot(x.astype(w1_ref.dtype), w1_ref[...],
                 preferred_element_type=jnp.float32) + b1_ref[...]
    h1 = jnp.maximum(h1, 0.0)
    h2 = jnp.dot(h1.astype(w2_ref.dtype), w2_ref[...],
                 preferred_element_type=jnp.float32) + b2_ref[...]
    h = x + h2
    mu = jnp.mean(h, axis=-1, keepdims=True)
    c = h - mu
    var = jnp.mean(c * c, axis=-1, keepdims=True)
    o = c * jax.lax.rsqrt(var + eps) * g_ref[...] + beta_ref[...]
    o_ref[...] = o.astype(o_ref.dtype)


# ---------------------------------------------------------------------------
# pallas_call wrappers
# ---------------------------------------------------------------------------

def _compiler_params(n_axes):
    return pltpu.CompilerParams(
        dimension_semantics=("parallel",) * n_axes,
        vmem_limit_bytes=_VMEM_LIMIT)


def _row_tile(n):
    # Target MXU-native tile heights (256 fits v6e/v7x MXU; here N is tiny so
    # the whole row slab is one tile).
    tm = n if n <= 256 else 256
    assert n % tm == 0, "row count must tile evenly at these demo shapes"
    return tm


def pallas_linear(x, w, b, out_dtype):
    """(N, Cin) @ (Cin, Cout) + (1, Cout), row-tiled over N = B*T."""
    n, cin = x.shape
    cout = w.shape[1]
    tm = _row_tile(n)
    ce = pl.CostEstimate(
        flops=2 * n * cin * cout,
        transcendentals=0,
        bytes_accessed=int(x.size * x.dtype.itemsize + w.size * w.dtype.itemsize
                           + b.size * b.dtype.itemsize
                           + n * cout * jnp.dtype(out_dtype).itemsize))
    # Weight / bias specs use a constant index_map, so the same block is
    # reused across all row tiles (no per-step refetch).
    return pl.pallas_call(
        _linear_kernel,
        out_shape=jax.ShapeDtypeStruct((n, cout), out_dtype),
        grid_spec=pltpu.PrefetchScalarGridSpec(
            num_scalar_prefetch=0,
            grid=(n // tm,),
            in_specs=[pl.BlockSpec((tm, cin), lambda i: (i, 0)),
                      pl.BlockSpec((cin, cout), lambda i: (0, 0)),
                      pl.BlockSpec((1, cout), lambda i: (0, 0))],
            out_specs=pl.BlockSpec((tm, cout), lambda i: (i, 0)),
        ),
        compiler_params=_compiler_params(1),
        cost_estimate=ce,
    )(x, w, b)


def pallas_mha_core(q, k, v):
    """q: (B,H,T,D) bf16, k/v: (B,H,S,D) bf16 -> ((B,H,T,D) bf16, (B,T,S) f32)."""
    B, H, T, D = q.shape
    S = k.shape[2]
    scale = 1.0 / math.sqrt(D)
    kernel = functools.partial(_mha_core_kernel, scale=scale)
    ce = pl.CostEstimate(
        flops=4 * B * H * T * S * D,
        transcendentals=B * H * T * S,
        bytes_accessed=int((q.size + k.size + v.size + B * H * T * D) * 2
                           + B * T * S * 4))
    return pl.pallas_call(
        kernel,
        out_shape=(jax.ShapeDtypeStruct((B, H, T, D), q.dtype),
                   jax.ShapeDtypeStruct((B, T, S), jnp.float32)),
        grid_spec=pltpu.PrefetchScalarGridSpec(
            num_scalar_prefetch=0,
            grid=(B,),
            in_specs=[pl.BlockSpec((1, H, T, D), lambda b: (b, 0, 0, 0)),
                      pl.BlockSpec((1, H, S, D), lambda b: (b, 0, 0, 0)),
                      pl.BlockSpec((1, H, S, D), lambda b: (b, 0, 0, 0))],
            out_specs=[pl.BlockSpec((1, H, T, D), lambda b: (b, 0, 0, 0)),
                       pl.BlockSpec((1, T, S), lambda b: (b, 0, 0))],
        ),
        compiler_params=_compiler_params(1),
        cost_estimate=ce,
    )(q, k, v)


def pallas_proj_add_ln(y, residual, w, b, gamma, beta):
    n, c = residual.shape
    tm = _row_tile(n)
    kernel = functools.partial(_proj_add_ln_kernel, eps=_LN_EPS)
    ce = pl.CostEstimate(
        flops=2 * n * c * c + 10 * n * c,
        transcendentals=n,
        bytes_accessed=int(y.size * y.dtype.itemsize + residual.size * 4
                           + w.size * w.dtype.itemsize + 3 * c * 4 + n * c * 4))
    row_spec = pl.BlockSpec((tm, c), lambda i: (i, 0))
    vec_spec = pl.BlockSpec((1, c), lambda i: (0, 0))
    return pl.pallas_call(
        kernel,
        out_shape=jax.ShapeDtypeStruct((n, c), jnp.float32),
        grid_spec=pltpu.PrefetchScalarGridSpec(
            num_scalar_prefetch=0,
            grid=(n // tm,),
            in_specs=[row_spec, row_spec,
                      pl.BlockSpec((c, c), lambda i: (0, 0)),
                      vec_spec, vec_spec, vec_spec],
            out_specs=row_spec,
        ),
        compiler_params=_compiler_params(1),
        cost_estimate=ce,
    )(y, residual, w, b, gamma, beta)


def pallas_ffn_add_ln(x, w1, b1, w2, b2, gamma, beta):
    n, c = x.shape
    f = w1.shape[1]
    tm = _row_tile(n)
    kernel = functools.partial(_ffn_add_ln_kernel, eps=_LN_EPS)
    ce = pl.CostEstimate(
        flops=4 * n * c * f + 12 * n * c,
        transcendentals=n,
        bytes_accessed=int(x.size * 4 + (w1.size + w2.size) * 2
                           + (f + 3 * c) * 4 + n * c * 4))
    row_spec = pl.BlockSpec((tm, c), lambda i: (i, 0))
    vec_c = pl.BlockSpec((1, c), lambda i: (0, 0))
    return pl.pallas_call(
        kernel,
        out_shape=jax.ShapeDtypeStruct((n, c), jnp.float32),
        grid_spec=pltpu.PrefetchScalarGridSpec(
            num_scalar_prefetch=0,
            grid=(n // tm,),
            in_specs=[row_spec,
                      pl.BlockSpec((c, f), lambda i: (0, 0)),
                      pl.BlockSpec((1, f), lambda i: (0, 0)),
                      pl.BlockSpec((f, c), lambda i: (0, 0)),
                      vec_c, vec_c, vec_c],
            out_specs=row_spec,
        ),
        compiler_params=_compiler_params(1),
        cost_estimate=ce,
    )(x, w1, b1, w2, b2, gamma, beta)


# ---------------------------------------------------------------------------
# Full decoder layer forward (wrapper = layout plumbing only)
# ---------------------------------------------------------------------------

def _to_heads(x2d, batch, n_tok, n_head, head_dim):
    return x2d.reshape(batch, n_tok, n_head, head_dim).transpose(0, 2, 1, 3)


def _merge_heads(y_bhtd, batch, n_tok, c):
    return y_bhtd.transpose(0, 2, 1, 3).reshape(batch * n_tok, c)


def transformer_decoder_layer(tgt, memory, params, n_head):
    B, T, C = tgt.shape
    _, S, _ = memory.shape
    assert C % n_head == 0
    D = C // n_head

    x2d = tgt.reshape(B * T, C)
    m2d = memory.reshape(B * S, C)

    # ---- self-attention block: x = norm1(x + self_attn(x, x, x)) ----
    qkv = pallas_linear(x2d, params["w_qkv_sa"], params["b_qkv_sa"], jnp.bfloat16)
    q, k, v = jnp.split(qkv, 3, axis=-1)
    y_sa, _ = pallas_mha_core(_to_heads(q, B, T, n_head, D),
                              _to_heads(k, B, T, n_head, D),
                              _to_heads(v, B, T, n_head, D))
    x1 = pallas_proj_add_ln(_merge_heads(y_sa, B, T, C), x2d,
                            params["w_proj_sa"], params["b_proj_sa"],
                            params["g1"], params["beta1"])

    # ---- cross-attention block: x = norm2(x + mha(x, mem, mem)) ----
    q_ca = pallas_linear(x1, params["w_q_ca"], params["b_q_ca"], jnp.bfloat16)
    kv_ca = pallas_linear(m2d, params["w_kv_ca"], params["b_kv_ca"], jnp.bfloat16)
    k_ca, v_ca = jnp.split(kv_ca, 2, axis=-1)
    y_ca, attn = pallas_mha_core(_to_heads(q_ca, B, T, n_head, D),
                                 _to_heads(k_ca, B, S, n_head, D),
                                 _to_heads(v_ca, B, S, n_head, D))
    x2 = pallas_proj_add_ln(_merge_heads(y_ca, B, T, C), x1,
                            params["w_proj_ca"], params["b_proj_ca"],
                            params["g2"], params["beta2"])

    # ---- feed-forward block: x = norm3(x + lin2(relu(lin1(x)))) ----
    x3 = pallas_ffn_add_ln(x2, params["w1"], params["b1"],
                           params["w2"], params["b2"],
                           params["g3"], params["beta3"])

    return x3.reshape(B, T, C), attn


# ---------------------------------------------------------------------------
# Parameters & pure-JAX reference (mirrors the same bf16/f32 cast points)
# ---------------------------------------------------------------------------

def init_decoder_layer_params(key, d_model, dim_feedforward, w_dtype=jnp.bfloat16):
    ks = jax.random.split(key, 14)
    C, F = d_model, dim_feedforward

    def lin(kw, kb, cin, cout):
        bound = 1.0 / math.sqrt(cin)
        w = jax.random.uniform(kw, (cin, cout), jnp.float32, -bound, bound)
        b = jax.random.uniform(kb, (1, cout), jnp.float32, -bound, bound)
        return w.astype(w_dtype), b

    p = {}
    p["w_qkv_sa"], p["b_qkv_sa"] = lin(ks[0], ks[1], C, 3 * C)
    p["w_proj_sa"], p["b_proj_sa"] = lin(ks[2], ks[3], C, C)
    p["w_q_ca"], p["b_q_ca"] = lin(ks[4], ks[5], C, C)
    p["w_kv_ca"], p["b_kv_ca"] = lin(ks[6], ks[7], C, 2 * C)
    p["w_proj_ca"], p["b_proj_ca"] = lin(ks[8], ks[9], C, C)
    p["w1"], p["b1"] = lin(ks[10], ks[11], C, F)
    p["w2"], p["b2"] = lin(ks[12], ks[13], F, C)
    ones = jnp.ones((1, C), jnp.float32)
    zeros = jnp.zeros((1, C), jnp.float32)
    p["g1"], p["beta1"] = ones, zeros
    p["g2"], p["beta2"] = ones, zeros
    p["g3"], p["beta3"] = ones, zeros
    return p


def _linear_ref(x, w, b):
    return jnp.dot(x.astype(w.dtype), w, preferred_element_type=jnp.float32) + b


def _layernorm_ref(x, g, beta, eps=_LN_EPS):
    mu = jnp.mean(x, axis=-1, keepdims=True)
    c = x - mu
    var = jnp.mean(c * c, axis=-1, keepdims=True)
    return c * jax.lax.rsqrt(var + eps) * g + beta


def decoder_layer_ref(tgt, memory, params, n_head):
    B, T, C = tgt.shape
    _, S, _ = memory.shape
    D = C // n_head
    scale = 1.0 / math.sqrt(D)

    def to_heads(x2d, n_tok):
        return x2d.reshape(B, n_tok, n_head, D).transpose(0, 2, 1, 3)

    def mha(q2d, k2d, v2d, t_kv):
        q, k, v = to_heads(q2d, T), to_heads(k2d, t_kv), to_heads(v2d, t_kv)
        s = jnp.einsum("bhtd,bhsd->bhts", q, k,
                       preferred_element_type=jnp.float32) * scale
        p = jax.nn.softmax(s, axis=-1)
        y = jnp.einsum("bhts,bhsd->bhtd", p.astype(v.dtype), v,
                       preferred_element_type=jnp.float32)
        y2d = y.astype(jnp.bfloat16).transpose(0, 2, 1, 3).reshape(B * T, C)
        return y2d, jnp.mean(p, axis=1)

    x2d = tgt.reshape(B * T, C)
    m2d = memory.reshape(B * S, C)

    qkv = _linear_ref(x2d, params["w_qkv_sa"], params["b_qkv_sa"]).astype(jnp.bfloat16)
    q, k, v = jnp.split(qkv, 3, axis=-1)
    y_sa, _ = mha(q, k, v, T)
    x1 = _layernorm_ref(_linear_ref(y_sa, params["w_proj_sa"], params["b_proj_sa"]) + x2d,
                        params["g1"], params["beta1"])

    q_ca = _linear_ref(x1, params["w_q_ca"], params["b_q_ca"]).astype(jnp.bfloat16)
    kv_ca = _linear_ref(m2d, params["w_kv_ca"], params["b_kv_ca"]).astype(jnp.bfloat16)
    k_ca, v_ca = jnp.split(kv_ca, 2, axis=-1)
    y_ca, attn = mha(q_ca, k_ca, v_ca, S)
    x2 = _layernorm_ref(_linear_ref(y_ca, params["w_proj_ca"], params["b_proj_ca"]) + x1,
                        params["g2"], params["beta2"])

    h1 = jnp.maximum(_linear_ref(x2, params["w1"], params["b1"]), 0.0)
    h2 = _linear_ref(h1, params["w2"], params["b2"])
    x3 = _layernorm_ref(x2 + h2, params["g3"], params["beta3"])

    return x3.reshape(B, T, C), attn


# ---------------------------------------------------------------------------

if __name__ == "__main__":
    B, T, S, C, H, F = 2, 8, 16, 128, 4, 256   # d_model=128 (lane-dense), 4 heads

    key = jax.random.PRNGKey(0)
    kt, km, kp = jax.random.split(key, 3)
    tgt = jax.random.normal(kt, (B, T, C), dtype=jnp.float32)
    memory = jax.random.normal(km, (B, S, C), dtype=jnp.float32)
    params = init_decoder_layer_params(kp, C, F)

    out, attn = transformer_decoder_layer(tgt, memory, params, H)
    out = jax.block_until_ready(out)
    attn = jax.block_until_ready(attn)

    ref_out, ref_attn = decoder_layer_ref(tgt, memory, params, H)
    assert out.shape == (B, T, C)
    assert attn.shape == (B, T, S)
    assert jnp.allclose(out, ref_out, atol=2e-2, rtol=2e-2), (
        "output mismatch, max abs diff = %f" % float(jnp.max(jnp.abs(out - ref_out))))
    assert jnp.allclose(attn, ref_attn, atol=1e-2, rtol=1e-2), (
        "attention mismatch, max abs diff = %f" % float(jnp.max(jnp.abs(attn - ref_attn))))

    print("KERNEL_OK")
</pallas_src>

<mosaic_0001>
module attributes {stable_mosaic.version = 11 : i64} {
  func.func @_linear_kernel(%arg0: i32, %arg1: memref<16x128xf32, #tpu.memory_space<vmem>>, %arg2: memref<128x384xbf16, #tpu.memory_space<vmem>>, %arg3: memref<1x384xf32, #tpu.memory_space<vmem>>, %arg4: memref<16x384xbf16, #tpu.memory_space<vmem>>) attributes {dimension_semantics = [#tpu.dimension_semantics<parallel>], iteration_bounds = array<i64: 1>, scalar_prefetch = 0 : i64, scratch_operands = 0 : i64, tpu.core_type = #tpu.core_type<tc>, window_params = [{transform_indices = @transform_0, window_bounds = array<i64: 16, 128>}, {pipeline_mode = #tpu.pipeline_mode<synchronous>, transform_indices = @transform_1, window_bounds = array<i64: 128, 384>}, {pipeline_mode = #tpu.pipeline_mode<synchronous>, transform_indices = @transform_2, window_bounds = array<i64: 1, 384>}, {transform_indices = @transform_3, window_bounds = array<i64: 16, 384>}]} {
    %c0 = arith.constant 0 : index
    %c0_0 = arith.constant 0 : index
    %0 = vector.load %arg1[%c0, %c0_0] : memref<16x128xf32, #tpu.memory_space<vmem>>, vector<16x128xf32>
    %1 = arith.truncf %0 : vector<16x128xf32> to vector<16x128xbf16>
    %c0_1 = arith.constant 0 : index
    %c0_2 = arith.constant 0 : index
    %2 = vector.load %arg2[%c0_1, %c0_2] : memref<128x384xbf16, #tpu.memory_space<vmem>>, vector<128x384xbf16>
    %cst = arith.constant dense<0.000000e+00> : vector<16x384xf32>
    %3 = tpu.matmul %1, %2, %cst {dimension_numbers = #tpu.dot_dimension_numbers<[1], [0], [0], [1], [0, 0, 1, 1], [], []>} : vector<16x128xbf16>, vector<128x384xbf16>, vector<16x384xf32> -> vector<16x384xf32>
    %c0_3 = arith.constant 0 : index
    %c0_4 = arith.constant 0 : index
    %4 = vector.load %arg3[%c0_3, %c0_4] : memref<1x384xf32, #tpu.memory_space<vmem>>, vector<1x384xf32>
    %5 = vector.broadcast %4 : vector<1x384xf32> to vector<16x384xf32>
    %6 = arith.addf %3, %5 : vector<16x384xf32>
    %7 = arith.truncf %6 : vector<16x384xf32> to vector<16x384xbf16>
    %c0_5 = arith.constant 0 : index
    %c0_6 = arith.constant 0 : index
    %8 = vector.load %arg4[%c0_5, %c0_6] : memref<16x384xbf16, #tpu.memory_space<vmem>>, vector<16x384xbf16>
    tpu.vector_store %arg4[%c0_5, %c0_6], %7 {strides = array<i32>} : memref<16x384xbf16, #tpu.memory_space<vmem>>, vector<16x384xbf16>,
    return
  }
  func.func @transform_0(%arg0: i32) -> (i32, i32) {
    %c0_i32 = arith.constant 0 : i32
    %c0_i32_0 = arith.constant 0 : i32
    return %arg0, %c0_i32 : i32, i32
  }
  func.func @transform_1(%arg0: i32) -> (i32, i32) {
    %c0_i32 = arith.constant 0 : i32
    %c0_i32_0 = arith.constant 0 : i32
    %c0_i32_1 = arith.constant 0 : i32
    return %c0_i32, %c0_i32_0 : i32, i32
  }
  func.func @transform_2(%arg0: i32) -> (i32, i32) {
    %c0_i32 = arith.constant 0 : i32
    %c0_i32_0 = arith.constant 0 : i32
    %c0_i32_1 = arith.constant 0 : i32
    return %c0_i32, %c0_i32_0 : i32, i32
  }
  func.func @transform_3(%arg0: i32) -> (i32, i32) {
    %c0_i32 = arith.constant 0 : i32
    %c0_i32_0 = arith.constant 0 : i32
    return %arg0, %c0_i32 : i32, i32
  }
}

</mosaic_0001>

<bundles_post_ra>
// kernel: tpu_custom_call.1
= control target key start
LH: loop header
LB: loop body
LE: loop exit
PB: predicated region body
PF: predicated region fallthrough
CT: control target
= control target key end

     0   :  { %8 = vsyncpa [#allocation3], 0  ;;  %s567_s0 = inlined_call_operand.hbm [shape: f32[16,128], index: 0, kind: input, shape index: {}]   ;;  %s568_s1 = inlined_call_operand.hbm [shape: bf16[128,384], index: 1, kind: input, shape index: {}]   ;;  %s569_s2 = inlined_call_operand.vmem [shape: f32[1,384], index: 2, kind: input, shape index: {}]   ;;  %s570_s3 = inlined_call_operand.hbm [shape: bf16[16,384], index: 3, kind: output, shape index: {}]  }
   0x1   :  { %9 = vsyncpa [#allocation6], 0 }
   0x2   :  { %10 = vsyncpa [#allocation4], 0  ;;  %s519_s12 = smov [#allocation2]  }
   0x3   :  { %s16_s13 = sshll.u32 %s519_s12, 4  ;;  %s17_s13 = int_to_ptr.vmem [resolvable:$true] %s16_s13 }
   0x4   :  { %s461_s14 = scalar_lea.vmem %s17_s13, 256  ;;  %p466_p1 = scmp.lt.s32.totalorder %s17_s13, %s17_s13 }
   0x5   :  { %p462_p0 = scmp.ne.s32.totalorder %s17_s13, %s461_s14  ;;  %p467_p2 = scmp.lt.s32.totalorder %s461_s14, %s461_s14 }
   0x7   :  { %p468_p3 = por %p467_p2, %p466_p1 }
   0x9   :  { %p469_p4 = pnand %p468_p3, %p462_p0 }
   0xb   :  { %472 = shalt.err (!%p469_p4)
}
   0xc   :  { %s520_s15 = smov 128   ;;  %s521_s16 = smov 8  }
   0xd   :  { %22 = dma.hbm_to_vmem [thread:$0]  %s567_s0, 256, %s17_s13, [#allocation3], %s520_s15, %s520_s15, %s521_s16  }
   0xe   :  { %s522_s19 = smov [#allocation5]  }
   0xf   :  { %s28_s20 = sshll.u32 %s522_s19, 4  ;;  %s29_s20 = int_to_ptr.vmem [resolvable:$true] %s28_s20 }
  0x10   :  { %s481_s21 = scalar_lea.vmem %s29_s20, 3072  ;;  %p486_p6 = scmp.lt.s32.totalorder %s29_s20, %s29_s20 }
  0x11   :  { %p482_p5 = scmp.ne.s32.totalorder %s29_s20, %s481_s21  ;;  %p487_p7 = scmp.lt.s32.totalorder %s481_s21, %s481_s21 }
  0x13   :  { %p488_p8 = por %p487_p7, %p486_p6 }
  0x15   :  { %p489_p9 = pnand %p488_p8, %p482_p5 }
  0x17   :  { %492 = shalt.err (!%p489_p9)
}
  0x18   :  { %s523_s22 = smov 192   ;;  %s524_s23 = smov 12  }
  0x19   :  { %34 = dma.hbm_to_vmem [thread:$0]  %s568_s1, 3072, %s29_s20, [#allocation6], %s523_s22, %s523_s22, %s524_s23  }
  0x1a   :  { %513 = dma.done.wait [#allocation3], 256  }
  0x1b   :  { %514 = vsyncadd [#allocation3], 4294967040 }
  0x1c   :  { %515 = dma.done.wait [#allocation6], 3072  }
  0x1d   :  { %516 = vsyncadd [#allocation6], 4294964224  ;;  %v525_v0 = vmov 0.0   ;;  %vm526_vm0 = vmmov 0   ;;  %v527_v1 = vmov 0   ;;  %v44_v25 = vld [vmem:[#allocation2] sm:$0xff]  ;;  %v81_v29 = vlaneseq }
  0x1e   :  { %391 = vmatprep.subr.bf16.mxu1 %v525_v0  ;;  %407 = vmatprep.mubr.msk.bf16.mxu1 %vm526_vm0, %v525_v0  ;;  %v421_v2 = vld [vmem:[#allocation5 + $0xac] ss:$12 sps:$4 sm:$0xff]   ;;  %v423_v3 = vld [vmem:[#allocation5 + $0xb0] ss:$12 sps:$4 sm:$0xff]   ;;  %v424_v4 = vld [vmem:[#allocation5 + $0xa8] ss:$12 sps:$4 sm:$0xff]  }
  0x1f   :  { %256 = vmatprep.mubr.bf16.mxu0 %v527_v1  ;;  %224 = vmatprep.subr.bf16.mxu0 %v421_v2  ;;  %v425_v5 = vld [vmem:[#allocation5 + $0x94] ss:$12 sps:$4 sm:$0xff]   ;;  %v427_v6 = vld [vmem:[#allocation5 + $0x98] ss:$12 sps:$4 sm:$0xff]   ;;  %v428_v7 = vld [vmem:[#allocation5 + $0x90] ss:$12 sps:$4 sm:$0xff]  }
  0x20   :  { %392 = vmatpush3.bf16.msra.mxu1 %v423_v3  ;;  %225 = vmatpush1.bf16.msra.mxu0 %v424_v4  ;;  %v429_v8 = vld [vmem:[#allocation5 + $0x7c] ss:$12 sps:$4 sm:$0xff]   ;;  %v431_v9 = vld [vmem:[#allocation5 + $0x80] ss:$12 sps:$4 sm:$0xff]   ;;  %v432_v10 = vld [vmem:[#allocation5 + $0x78] ss:$12 sps:$4 sm:$0xff]  }
  0x21   :  { %393 = vmatprep.subr.bf16.mxu1 %v525_v0  ;;  %226 = vmatprep.subr.bf16.mxu0 %v425_v5  ;;  %v433_v11 = vld [vmem:[#allocation5 + $0x64] ss:$12 sps:$4 sm:$0xff]   ;;  %v435_v12 = vld [vmem:[#allocation5 + $0x68] ss:$12 sps:$4 sm:$0xff]   ;;  %v436_v13 = vld [vmem:[#allocation5 + $0x60] ss:$12 sps:$4 sm:$0xff]  }
  0x22   :  { %v437_v14 = vld [vmem:[#allocation5 + $0x4c] ss:$12 sps:$4 sm:$0xff]   ;;  %v439_v15 = vld [vmem:[#allocation5 + $0x50] ss:$12 sps:$4 sm:$0xff]   ;;  %v440_v16 = vld [vmem:[#allocation5 + $0x48] ss:$12 sps:$4 sm:$0xff]  }
  0x23   :  { %v441_v17 = vld [vmem:[#allocation5 + $0x34] ss:$12 sps:$4 sm:$0xff]   ;;  %v443_v18 = vld [vmem:[#allocation5 + $0x38] ss:$12 sps:$4 sm:$0xff]   ;;  %v444_v19 = vld [vmem:[#allocation5 + $0x30] ss:$12 sps:$4 sm:$0xff]  }
  0x24   :  { %394 = vmatpush3.bf16.msra.mxu1 %v427_v6  ;;  %227 = vmatpush1.bf16.msra.mxu0 %v428_v7  ;;  %v445_v20 = vld [vmem:[#allocation5 + $0x1c] ss:$12 sps:$4 sm:$0xff]   ;;  %v447_v21 = vld [vmem:[#allocation5 + $0x20] ss:$12 sps:$4 sm:$0xff]   ;;  %v448_v22 = vld [vmem:[#allocation5 + $0x18] ss:$12 sps:$4 sm:$0xff]  }
  0x25   :  { %395 = vmatprep.subr.bf16.mxu1 %v525_v0  ;;  %228 = vmatprep.subr.bf16.mxu0 %v429_v8  ;;  %v449_v23 = vld [vmem:[#allocation5 + $0x4] ss:$12 sps:$4 sm:$0xff]   ;;  %v451_v24 = vld [vmem:[#allocation5 + $0x8] ss:$12 sps:$4 sm:$0xff]   ;;  %v45_v26 = vld [vmem:[#allocation2 + $0x8] sm:$0xff]  ;;  %v82_v30 = vshrl.u32 %v81_v29, 7 }
  0x26   :  { %v452_v27 = vld [vmem:[#allocation5] ss:$12 sps:$4 sm:$0xff]   ;;  %v46_v28 = vpack.c.bf16 %v45_v26, %v44_v25  ;;  %v79_v32 = vld [vmem:[%s569_s2] sm:$0x7]  ;;  %s528_s2 = smov [#allocation7]  }
  0x27   :  { %v91_v31 = vsub.s32 2, %v82_v30  ;;  %v83_v33 = vsub.s32 0, %v82_v30  ;;  %v87_v34 = vsub.s32 1, %v82_v30  ;;  %s337_s26 = sshll.u32 %s528_s2, 4  ;;  %s338_s26 = int_to_ptr.vmem [resolvable:$true] %s337_s26 }
  0x28   :  { %396 = vmatpush3.bf16.msra.mxu1 %v431_v9  ;;  %229 = vmatpush1.bf16.msra.mxu0 %v432_v10  ;;  %s493_s27 = scalar_lea.vmem %s338_s26, 384  ;;  %p498_p11 = scmp.lt.s32.totalorder %s338_s26, %s338_s26 }
  0x29   :  { %397 = vmatprep.subr.bf16.mxu1 %v525_v0  ;;  %230 = vmatprep.subr.bf16.mxu0 %v433_v11  ;;  %v92_v35 = vrot.slane %v79_v32, %v91_v31  ;;  %v84_v37 = vrot.slane %v79_v32, %v83_v33  ;;  %v88_v38 = vrot.slane %v79_v32, %v87_v34  ;;  %p494_p10 = scmp.ne.s32.totalorder %s338_s26, %s493_s27  ;;  %p499_p12 = scmp.lt.s32.totalorder %s493_s27, %s493_s27 }
  0x2b   :  { %p500_p13 = por %p499_p12, %p498_p11 }
  0x2c   :  { %398 = vmatpush3.bf16.msra.mxu1 %v435_v12  ;;  %231 = vmatpush1.bf16.msra.mxu0 %v436_v13 }
  0x2d   :  { %399 = vmatprep.subr.bf16.mxu1 %v525_v0  ;;  %232 = vmatprep.subr.bf16.mxu0 %v437_v14  ;;  %p501_p0 = pnand %p500_p13, %p494_p10 }
  0x30   :  { %400 = vmatpush3.bf16.msra.mxu1 %v439_v15  ;;  %233 = vmatpush1.bf16.msra.mxu0 %v440_v16 }
  0x31   :  { %401 = vmatprep.subr.bf16.mxu1 %v525_v0  ;;  %234 = vmatprep.subr.bf16.mxu0 %v441_v17 }
  0x34   :  { %402 = vmatpush3.bf16.msra.mxu1 %v443_v18  ;;  %235 = vmatpush1.bf16.msra.mxu0 %v444_v19 }
  0x35   :  { %403 = vmatprep.subr.bf16.mxu1 %v525_v0  ;;  %236 = vmatprep.subr.bf16.mxu0 %v445_v20 }
  0x38   :  { %404 = vmatpush3.bf16.msra.mxu1 %v447_v21  ;;  %237 = vmatpush1.bf16.msra.mxu0 %v448_v22 }
  0x39   :  { %405 = vmatprep.subr.bf16.mxu1 %v525_v0  ;;  %238 = vmatprep.subr.bf16.mxu0 %v449_v23 }
  0x3c   :  { %406 = vmatpush3.bf16.msra.mxu1 %v451_v24  ;;  %239 = vmatpush1.bf16.msra.mxu0 %v452_v27 }
  0x3f   :  { %408 = vmatmul.mubr.bf16.vlgmr.msra.gmra.mxu1 %v46_v28  ;;  %257 = vmatmul.mubr.bf16.vlgmr.msra.gmra.mxu0 %v46_v28 }
  0xff   :  { %v301_v36 = vpop.f32.mrf.mxu1  ;;  %v258_v40 = vpop.f32.mrf.mxu0 }
 0x100   :  { %v302_v39 = vadd.f32 %v301_v36, %v92_v35  ;;  %v259_v44 = vadd.f32 %v258_v40, %v84_v37 }
 0x101   :  { %v409_v41 = vpop.f32.mrf.mxu1  ;;  %v260_v43 = vpop.f32.mrf.mxu0 }
 0x102   :  { %v379_v42 = vpack.c.bf16 %v302_v39, %v302_v39  ;;  %v261_v45 = vadd.f32 %v260_v43, %v88_v38 }
 0x103   :  { %v304_v46 = vpop.f32.mrf.mxu1  ;;  %v262_v48 = vpop.f32.mrf.mxu0 }
 0x104   :  { %329 = vst [vmem:[#allocation7 + $0x8] sm:$0xf] %v379_v42  ;;  %v305_v47 = vadd.f32 %v304_v46, %v92_v35  ;;  %v378_v49 = vpack.c.bf16 %v261_v45, %v259_v44  ;;  %v263_v53 = vadd.f32 %v262_v48, %v84_v37 }
 0x105   :  { %v410_v50 = vpop.f32.mrf.mxu1  ;;  %v264_v52 = vpop.f32.mrf.mxu0 }
 0x106   :  { %v381_v51 = vpack.c.bf16 %v305_v47, %v305_v47  ;;  %328 = vst [vmem:[#allocation7] sm:$0xff] %v378_v49  ;;  %v265_v54 = vadd.f32 %v264_v52, %v88_v38 }
 0x108   :  { %331 = vst [vmem:[#allocation7 + $0x14] sm:$0xf] %v381_v51  ;;  %v380_v55 = vpack.c.bf16 %v265_v54, %v263_v53 }
 0x10a   :  { %330 = vst [vmem:[#allocation7 + $0xc] sm:$0xff] %v380_v55 }
 0x10b   :  { %504 = shalt.err (!%p501_p0)
}
 0x10c   :  { %343 = dma.vmem_to_hbm [thread:$0]  %s338_s26, 384, %s570_s3, [#allocation4], %s523_s22, %s523_s22, %s524_s23  }
 0x10d   :  { %517 = dma.done.wait [#allocation4], 384  }
 0x10e   :  { %518 = vsyncadd [#allocation4], 4294966912 }
 0x10f   :  { %347 = vsyncpa [#allocation3], 1 }
 0x110   :  { %348 = vsyncpa [#allocation6], 1 }
 0x111   :  { %349 = vsyncpa [#allocation4], 1 }

</bundles_post_ra>
